<compile_context>
chip_gen: v7x
topology: tpu7x:2x2x1
jax: 0.10.0
libtpu: 0.0.40
codegen_flags: <defaults>
</compile_context>

<pallas_src>
import jax
import jax.numpy as jnp
from jax.experimental import pallas as pl
from jax.experimental.pallas import tpu as pltpu


def dqn_mlp_kernel(x_ref, w1_ref, b1_ref, w2_ref, b2_ref, out_ref):
    # fc1: (TM, S) bf16 @ (S, Hp) bf16 -> f32 accumulate; bias + relu in f32.
    x = x_ref[...].astype(jnp.bfloat16)               # free VPU cast in-kernel
    h = jnp.dot(x, w1_ref[...], preferred_element_type=jnp.float32)
    h = jnp.maximum(h + b1_ref[...], 0.0)
    # out: (TM, Hp) bf16 @ (Hp, A) bf16 -> f32 accumulate; bias in f32.
    y = jnp.dot(h.astype(w2_ref.dtype), w2_ref[...],
                preferred_element_type=jnp.float32)
    out_ref[...] = (y + b2_ref[...]).astype(out_ref.dtype)


def _round_up(x, m):
    return (x + m - 1) // m * m


def prepare_params(w1, b1, w2, b2):
    """One-time weight prep (do NOT call per forward).

    w1: (H, S), b1: (H,), w2: (A, H), b2: (A,)  ->  padded, pre-transposed
    bf16 weights + f32 biases. Hidden dim padded to 128 (lane-dense MXU
    operands; padded entries are zero so relu/matmul-2 stay exact).
    """
    H, S = w1.shape
    A = w2.shape[0]
    H_pad = _round_up(H, 128)          # 50 -> 128

    w1t = jnp.zeros((S, H_pad), jnp.bfloat16).at[:, :H].set(
        w1.T.astype(jnp.bfloat16))
    b1p = jnp.zeros((1, H_pad), jnp.float32).at[0, :H].set(
        b1.astype(jnp.float32))
    w2t = jnp.zeros((H_pad, A), jnp.bfloat16).at[:H, :].set(
        w2.T.astype(jnp.bfloat16))
    b2p = b2.astype(jnp.float32).reshape(1, A)
    return w1t, b1p, w2t, b2p


def dqn_forward(x, w1t, b1p, w2t, b2p, *, block_rows=4096):
    """x: (B, S) f32 (unpadded). Params from prepare_params().
    Returns (B, A) f32 = relu(x @ w1.T + b1) @ w2.T + b2."""
    B, S = x.shape
    H_pad = w1t.shape[1]
    A = w2t.shape[1]

    # Batch tile: big enough to amortize per-grid-step overhead, small enough
    # that large B still yields >= 2 grid steps (v7x megacore sharding).
    TM = min(block_rows, _round_up(B, 8))
    grid = (pl.cdiv(B, TM),)           # ragged last tile: OOB rows read
                                       # undefined data but their output
                                       # writes are masked by Pallas.

    return pl.pallas_call(
        dqn_mlp_kernel,
        out_shape=jax.ShapeDtypeStruct((B, A), jnp.float32),
        grid_spec=pl.GridSpec(
            grid=grid,
            in_specs=[
                pl.BlockSpec((TM, S), lambda i: (i, 0)),       # x: batch-tiled
                pl.BlockSpec((S, H_pad), lambda i: (0, 0)),    # w1t: resident
                pl.BlockSpec((1, H_pad), lambda i: (0, 0)),    # b1:  resident
                pl.BlockSpec((H_pad, A), lambda i: (0, 0)),    # w2t: resident
                pl.BlockSpec((1, A), lambda i: (0, 0)),        # b2:  resident
            ],
            out_specs=pl.BlockSpec((TM, A), lambda i: (i, 0)),
        ),
        compiler_params=pltpu.CompilerParams(
            dimension_semantics=("parallel",),
        ),
    )(x, w1t, b1p, w2t, b2p)


def init_params(key, states_dim, n_actions, hidden=50):
    k1, k2, k3, k4 = jax.random.split(key, 4)
    # PyTorch: weight.data.normal_(0, 0.1); biases keep default nn.Linear init
    # (uniform(-1/sqrt(fan_in), 1/sqrt(fan_in))).
    w1 = 0.1 * jax.random.normal(k1, (hidden, states_dim), jnp.float32)
    b1 = jax.random.uniform(k2, (hidden,), jnp.float32,
                            -1.0 / jnp.sqrt(states_dim),
                            1.0 / jnp.sqrt(states_dim))
    w2 = 0.1 * jax.random.normal(k3, (n_actions, hidden), jnp.float32)
    b2 = jax.random.uniform(k4, (n_actions,), jnp.float32,
                            -1.0 / jnp.sqrt(hidden), 1.0 / jnp.sqrt(hidden))
    return w1, b1, w2, b2


if __name__ == "__main__":
    key = jax.random.PRNGKey(0)
    states_dim, n_actions, batch = 8, 4, 2
    kx, kp, kx2 = jax.random.split(key, 3)

    w1, b1, w2, b2 = init_params(kp, states_dim, n_actions)
    w1t, b1p, w2t, b2p = prepare_params(w1, b1, w2, b2)   # hoisted, once

    # Small batch (ragged: B=2 < TM=8)
    x = jax.random.normal(kx, (batch, states_dim), jnp.float32)
    out = dqn_forward(x, w1t, b1p, w2t, b2p)
    jax.block_until_ready(out)

    ref = jnp.maximum(x @ w1.T + b1, 0.0) @ w2.T + b2
    assert out.shape == (batch, n_actions)
    assert jnp.allclose(out, ref, rtol=2e-2, atol=2e-2), "mismatch (small batch)"

    # Multi-tile + ragged last tile check (3 tiles of 16 rows covering 37).
    x2 = jax.random.normal(kx2, (37, states_dim), jnp.float32)
    out2 = dqn_forward(x2, w1t, b1p, w2t, b2p, block_rows=16)
    jax.block_until_ready(out2)
    ref2 = jnp.maximum(x2 @ w1.T + b1, 0.0) @ w2.T + b2
    assert out2.shape == (37, n_actions)
    assert jnp.allclose(out2, ref2, rtol=2e-2, atol=2e-2), "mismatch (ragged grid)"

    print("KERNEL_OK")
</pallas_src>

<mosaic_0001>
module attributes {stable_mosaic.version = 11 : i64} {
  func.func @dqn_mlp_kernel(%arg0: i32, %arg1: memref<8x8xf32, #tpu.memory_space<vmem>>, %arg2: memref<8x128xbf16, #tpu.memory_space<vmem>>, %arg3: memref<1x128xf32, #tpu.memory_space<vmem>>, %arg4: memref<128x4xbf16, #tpu.memory_space<vmem>>, %arg5: memref<1x4xf32, #tpu.memory_space<vmem>>, %arg6: memref<8x4xf32, #tpu.memory_space<vmem>>) attributes {dimension_semantics = [#tpu.dimension_semantics<parallel>], iteration_bounds = array<i64: 1>, scalar_prefetch = 0 : i64, scratch_operands = 0 : i64, tpu.core_type = #tpu.core_type<tc>, window_params = [{transform_indices = @transform_0, window_bounds = array<i64: 8, 8>}, {pipeline_mode = #tpu.pipeline_mode<synchronous>, transform_indices = @transform_1, window_bounds = array<i64: 8, 128>}, {pipeline_mode = #tpu.pipeline_mode<synchronous>, transform_indices = @transform_2, window_bounds = array<i64: 1, 128>}, {pipeline_mode = #tpu.pipeline_mode<synchronous>, transform_indices = @transform_3, window_bounds = array<i64: 128, 4>}, {pipeline_mode = #tpu.pipeline_mode<synchronous>, transform_indices = @transform_4, window_bounds = array<i64: 1, 4>}, {transform_indices = @transform_5, window_bounds = array<i64: 8, 4>}]} {
    %c0 = arith.constant 0 : index
    %c0_0 = arith.constant 0 : index
    %0 = vector.load %arg1[%c0, %c0_0] : memref<8x8xf32, #tpu.memory_space<vmem>>, vector<8x8xf32>
    %1 = arith.truncf %0 : vector<8x8xf32> to vector<8x8xbf16>
    %c0_1 = arith.constant 0 : index
    %c0_2 = arith.constant 0 : index
    %2 = vector.load %arg2[%c0_1, %c0_2] : memref<8x128xbf16, #tpu.memory_space<vmem>>, vector<8x128xbf16>
    %cst = arith.constant dense<0.000000e+00> : vector<8x128xf32>
    %3 = tpu.matmul %1, %2, %cst {dimension_numbers = #tpu.dot_dimension_numbers<[1], [0], [0], [1], [0, 0, 1, 1], [], []>} : vector<8x8xbf16>, vector<8x128xbf16>, vector<8x128xf32> -> vector<8x128xf32>
    %c0_3 = arith.constant 0 : index
    %c0_4 = arith.constant 0 : index
    %4 = vector.load %arg3[%c0_3, %c0_4] : memref<1x128xf32, #tpu.memory_space<vmem>>, vector<1x128xf32>
    %5 = vector.broadcast %4 : vector<1x128xf32> to vector<8x128xf32>
    %6 = arith.addf %3, %5 : vector<8x128xf32>
    %cst_5 = arith.constant 0.000000e+00 : f32
    %7 = vector.broadcast %cst_5 : f32 to vector<8x128xf32>
    %8 = arith.maximumf %6, %7 : vector<8x128xf32>
    %9 = arith.truncf %8 : vector<8x128xf32> to vector<8x128xbf16>
    %c0_6 = arith.constant 0 : index
    %c0_7 = arith.constant 0 : index
    %10 = vector.load %arg4[%c0_6, %c0_7] : memref<128x4xbf16, #tpu.memory_space<vmem>>, vector<128x4xbf16>
    %cst_8 = arith.constant dense<0.000000e+00> : vector<8x4xf32>
    %11 = tpu.matmul %9, %10, %cst_8 {dimension_numbers = #tpu.dot_dimension_numbers<[1], [0], [0], [1], [0, 0, 1, 1], [], []>} : vector<8x128xbf16>, vector<128x4xbf16>, vector<8x4xf32> -> vector<8x4xf32>
    %c0_9 = arith.constant 0 : index
    %c0_10 = arith.constant 0 : index
    %12 = vector.load %arg5[%c0_9, %c0_10] : memref<1x4xf32, #tpu.memory_space<vmem>>, vector<1x4xf32>
    %13 = vector.broadcast %12 : vector<1x4xf32> to vector<8x4xf32>
    %14 = arith.addf %11, %13 : vector<8x4xf32>
    %c0_11 = arith.constant 0 : index
    %c0_12 = arith.constant 0 : index
    %15 = vector.load %arg6[%c0_11, %c0_12] : memref<8x4xf32, #tpu.memory_space<vmem>>, vector<8x4xf32>
    tpu.vector_store %arg6[%c0_11, %c0_12], %14 {strides = array<i32>} : memref<8x4xf32, #tpu.memory_space<vmem>>, vector<8x4xf32>,
    return
  }
  func.func @transform_0(%arg0: i32) -> (i32, i32) {
    %c0_i32 = arith.constant 0 : i32
    %c0_i32_0 = arith.constant 0 : i32
    return %arg0, %c0_i32 : i32, i32
  }
  func.func @transform_1(%arg0: i32) -> (i32, i32) {
    %c0_i32 = arith.constant 0 : i32
    %c0_i32_0 = arith.constant 0 : i32
    %c0_i32_1 = arith.constant 0 : i32
    return %c0_i32, %c0_i32_0 : i32, i32
  }
  func.func @transform_2(%arg0: i32) -> (i32, i32) {
    %c0_i32 = arith.constant 0 : i32
    %c0_i32_0 = arith.constant 0 : i32
    %c0_i32_1 = arith.constant 0 : i32
    return %c0_i32, %c0_i32_0 : i32, i32
  }
  func.func @transform_3(%arg0: i32) -> (i32, i32) {
    %c0_i32 = arith.constant 0 : i32
    %c0_i32_0 = arith.constant 0 : i32
    %c0_i32_1 = arith.constant 0 : i32
    return %c0_i32, %c0_i32_0 : i32, i32
  }
  func.func @transform_4(%arg0: i32) -> (i32, i32) {
    %c0_i32 = arith.constant 0 : i32
    %c0_i32_0 = arith.constant 0 : i32
    %c0_i32_1 = arith.constant 0 : i32
    return %c0_i32, %c0_i32_0 : i32, i32
  }
  func.func @transform_5(%arg0: i32) -> (i32, i32) {
    %c0_i32 = arith.constant 0 : i32
    %c0_i32_0 = arith.constant 0 : i32
    return %arg0, %c0_i32 : i32, i32
  }
}

</mosaic_0001>

<bundles_post_ra>
// kernel: tpu_custom_call.1
= control target key start
LH: loop header
LB: loop body
LE: loop exit
PB: predicated region body
PF: predicated region fallthrough
CT: control target
= control target key end

     0   :  { %10 = vsyncpa [#allocation3], 0  ;;  %vm36_vm0 = vcmask 1043456   ;;  %v296_v1 = vmov 0.0   ;;  %vm297_vm1 = vmmov 0   ;;  %vm32_vm2 = vcmask 64512   ;;  %s379_s0 = inlined_call_operand.vmem [shape: f32[2,8], index: 0, kind: input, shape index: {}]   ;;  %s380_s1 = inlined_call_operand.vmem [shape: bf16[8,128], index: 1, kind: input, shape index: {}]   ;;  %s381_s2 = inlined_call_operand.vmem [shape: f32[1,128], index: 2, kind: input, shape index: {}]   ;;  %s382_s3 = inlined_call_operand.vmem [shape: bf16[128,4], index: 3, kind: input, shape index: {}]   ;;  %s383_s4 = inlined_call_operand.vmem [shape: f32[1,4], index: 4, kind: input, shape index: {}]   ;;  %s384_s5 = inlined_call_operand.hbm [shape: f32[2,4], index: 5, kind: output, shape index: {}]  }
   0x1   :  { %v24_v0 = vld [vmem:[%s380_s1] sm:$0xf]  ;;  %233 = vmatprep.subr.bf16.mxu0 %v296_v1  ;;  %239 = vmatprep.subr.bf16.mxu1 %v296_v1  ;;  %v265_v6 = vld [vmem:[%s382_s3 + $0x8] sm:$0xff]   ;;  %v266_v7 = vld [vmem:[%s382_s3 + $0x10] sm:$0xff]   ;;  %vm193_vm3 = vcmask 31744  }
   0x2   :  { %v38_v2 = vsel %vm36_vm0, %v24_v0, 0  ;;  %v22_v3 = vld [vmem:[%s379_s0] sm:$0xff]  ;;  %235 = vmatprep.mubr.msk.bf16.mxu0 %vm297_vm1, %v296_v1  ;;  %255 = vmatprep.mubr.msk.bf16.mxu1 %vm297_vm1, %v296_v1  ;;  %v267_v8 = vld [vmem:[%s382_s3 + $0x18] sm:$0xff]   ;;  %v269_v10 = vld [vmem:[%s382_s3 + $0x28] sm:$0xff]  }
   0x3   :  { %234 = vmatpush3.bf16.msra.mxu0 %v38_v2  ;;  %v23_v4 = vpack.c.bf16 %v22_v3, %v22_v3  ;;  %v264_v5 = vld [vmem:[%s382_s3] sm:$0xff]   ;;  %v270_v11 = vld [vmem:[%s382_s3 + $0x30] sm:$0xff]   ;;  %v271_v12 = vld [vmem:[%s382_s3 + $0x38] sm:$0xff]  }
   0x4   :  { %240 = vmatpush3.bf16.msra.mxu1 %v264_v5  ;;  %v268_v9 = vld [vmem:[%s382_s3 + $0x20] sm:$0xff]  }
   0x5   :  { %241 = vmatprep.subr.bf16.mxu1 %v296_v1  ;;  %v211_v13 = vld [vmem:[%s381_s2] ss:$0 sm:$0xff] }
   0x6   :  { %236 = vmatmul.mubr.msk.bf16.vlgmr.msra.gmra.mrb[0].mxu0 %vm32_vm2, %v23_v4  ;;  %v213_v21 = vld [vmem:[%s383_s4] ss:$0 sm:$0xff] }
   0x8   :  { %242 = vmatpush3.bf16.msra.mxu1 %v265_v6 }
   0x9   :  { %243 = vmatprep.subr.bf16.mxu1 %v296_v1 }
   0xc   :  { %244 = vmatpush3.bf16.msra.mxu1 %v266_v7 }
   0xd   :  { %245 = vmatprep.subr.bf16.mxu1 %v296_v1 }
  0x10   :  { %246 = vmatpush3.bf16.msra.mxu1 %v267_v8 }
  0x11   :  { %247 = vmatprep.subr.bf16.mxu1 %v296_v1 }
  0x14   :  { %248 = vmatpush3.bf16.msra.mxu1 %v268_v9 }
  0x15   :  { %249 = vmatprep.subr.bf16.mxu1 %v296_v1 }
  0x18   :  { %250 = vmatpush3.bf16.msra.mxu1 %v269_v10 }
  0x19   :  { %251 = vmatprep.subr.bf16.mxu1 %v296_v1 }
  0x1c   :  { %252 = vmatpush3.bf16.msra.mxu1 %v270_v11 }
  0x1d   :  { %253 = vmatprep.subr.bf16.mxu1 %v296_v1 }
  0x20   :  { %254 = vmatpush3.bf16.msra.mxu1 %v271_v12 }
  0xd9   :  { %v74_v14 = vpop.f32.mrb[0].mxu0 }
  0xda   :  { %v75_v15 = vadd.f32 %v211_v13, %v74_v14  ;;  %v237_v16 = vpop.f32.mrb[1].mxu0 }
  0xdb   :  { %v77_v17 = vpop.f32.mrb[2].mxu0 }
  0xdc   :  { %v80_v18 = vmax.f32 %v75_v15, 0.0  ;;  %v238_v19 = vpop.f32.mrb[3].mxu0 }
  0xde   :  { %v81_v20 = vpack.c.bf16 %v80_v18, %v80_v18 }
  0xe0   :  { %256 = vmatmul.mubr.bf16.vlgmr.msra.gmra.mrb[0].mxu1 %v81_v20 }
 0x1b3   :  { %v187_v22 = vpop.f32.mrb[0].mxu1 }
 0x1b4   :  { %v188_v23 = vadd.f32 %v213_v21, %v187_v22  ;;  %v257_v24 = vpop.f32.mrb[1].mxu1 }
 0x1b5   :  { %v190_v25 = vpop.f32.mrb[2].mxu1 }
 0x1b6   :  { %194 = vst.msk [vmem:[#allocation2] sm:$0xff] %vm193_vm3, %v188_v23  ;;  %v258_v26 = vpop.f32.mrb[3].mxu1 }
 0x1b7   :  { %199 = vsyncadd [#allocation3], 96  ;;  %s298_s2 = smov [#allocation2]  }
 0x1b8   :  { %s200_s3 = sshll.u32 %s298_s2, 4  ;;  %s201_s3 = int_to_ptr.vmem [resolvable:$true] %s200_s3 }
 0x1b9   :  { %s272_s15 = scalar_lea.vmem %s201_s3, 32  ;;  %s276_s16 = scalar_lea.vmem %s201_s3, 128 }
 0x1ba   :  { %p273_p0 = scmp.ne.s32.totalorder %s201_s3, %s272_s15  ;;  %p277_p1 = scmp.lt.s32.totalorder %s201_s3, %s201_s3 }
 0x1bb   :  { %p278_p2 = scmp.lt.s32.totalorder %s276_s16, %s272_s15 }
 0x1bd   :  { %p279_p3 = por %p278_p2, %p277_p1 }
 0x1bf   :  { %p280_p4 = pnand %p279_p3, %p273_p0 }
 0x1c1   :  { %283 = shalt.err (!%p280_p4)
}
 0x1c2   :  { %s284_s18 = scalar_lea.hbm %s384_s5, 32 }
 0x1c3   :  { %p285_p5 = scmp.ne.s32.totalorder %s384_s5, %s284_s18  ;;  %p288_p6 = scmp.lt.u32.totalorder %s284_s18, %s384_s5 }
 0x1c5   :  { %p290_p7 = pnand %p288_p6, %p285_p5 }
 0x1c7   :  { %293 = shalt.err (!%p290_p7)
}
 0x1c8   :  { %s299_s23 = smov 32   ;;  %s300_s1 = smov 2  }
 0x1c9   :  { %206 = dma.vmem_to_hbm [thread:$0]  %s201_s3, 32, %s384_s5, [#allocation3], %s299_s23, %s299_s23, %s300_s1  }
 0x1ca   :  { %294 = dma.done.wait [#allocation3], 128  }
 0x1cb   :  { %295 = vsyncadd [#allocation3], 4294967168 }
 0x1cc   :  { %210 = vsyncpa [#allocation3], 1 }

</bundles_post_ra>
